<compile_context>
chip_gen: v6e
topology: v6e:2x2x1
jax: 0.10.0
libtpu: 0.0.40
codegen_flags: <defaults>
</compile_context>

<pallas_src>
import functools

import jax
import jax.numpy as jnp
from jax.experimental import pallas as pl
from jax.experimental.pallas import tpu as pltpu


_VMEM_LIMIT_BYTES = 48 * 1024 * 1024   # safe on v5e/v6e (128 MiB) and v7x (64 MiB physical)
_VMEM_TILE_BUDGET = 40 * 1024 * 1024   # budget used when choosing the batch tile


def _maskgen_kernel(z_ref, w1_ref, b1_ref, w2_ref, b2_ref, w3_ref, b3_ref, o_ref):
    # z_ref: (tb, noise_dim); w1: (noise_dim, H); w2: (H, 2H); w3: (2H, W*F)
    z = z_ref[...]

    h1 = jnp.dot(z, w1_ref[...], preferred_element_type=jnp.float32) + b1_ref[...]
    h1 = jnp.where(h1 > 0, h1, 0.2 * h1)                       # LeakyReLU(0.2)

    h2 = jnp.dot(h1, w2_ref[...], preferred_element_type=jnp.float32) + b2_ref[...]
    h2 = jnp.where(h2 > 0, h2, 0.2 * h2)                       # LeakyReLU(0.2)

    h3 = jnp.dot(h2, w3_ref[...], preferred_element_type=jnp.float32) + b3_ref[...]
    o_ref[...] = (1.0 / (1.0 + jnp.exp(-h3))).astype(o_ref.dtype)   # Sigmoid (EUP exp)


def _pick_batch_tile(batch, noise_dim, hidden_dim, d_out, max_tb=512):
    """Largest batch tile (multiple of 8, <= max_tb) that fits the VMEM budget."""
    # double-buffered in/out tiles + live f32 activations, bytes per batch row
    per_row = 4 * (2 * noise_dim + 2 * d_out + hidden_dim + 2 * hidden_dim + d_out)
    # resident weights/biases (double-buffered by the default BlockSpec pipeline)
    w_bytes = 8 * (noise_dim * hidden_dim + hidden_dim
                   + hidden_dim * 2 * hidden_dim + 2 * hidden_dim
                   + 2 * hidden_dim * d_out + d_out)
    avail = max(_VMEM_TILE_BUDGET - w_bytes, 8 * per_row)
    tb = min(max_tb, batch, avail // per_row)
    if tb >= batch:
        return batch                      # single full-extent block is always legal
    return max(8, (tb // 8) * 8)          # keep the (8,128) block constraint satisfied


@functools.partial(jax.jit, static_argnames=("window_size", "n_features", "block_b"))
def mask_generator_forward(z, params, window_size, n_features, block_b=512):
    """z: (B, noise_dim) f32 noise.  Returns mask (B, window_size, n_features) in (0,1)."""
    w1, b1, w2, b2, w3, b3 = params
    B, noise_dim = z.shape
    hidden_dim = w1.shape[1]
    d_out = w3.shape[1]
    assert d_out == window_size * n_features

    tb = _pick_batch_tile(B, noise_dim, hidden_dim, d_out, max_tb=block_b)
    grid = (pl.cdiv(B, tb),)
    const = lambda i: (0, 0)              # weights/biases: same (resident) block every step

    flat = pl.pallas_call(
        _maskgen_kernel,
        out_shape=jax.ShapeDtypeStruct((B, d_out), jnp.float32),
        grid_spec=pltpu.PrefetchScalarGridSpec(
            num_scalar_prefetch=0,
            grid=grid,
            in_specs=[
                pl.BlockSpec((tb, noise_dim), lambda i: (i, 0)),     # z tile over batch
                pl.BlockSpec((noise_dim, hidden_dim), const),        # W1
                pl.BlockSpec((1, hidden_dim), const),                # b1
                pl.BlockSpec((hidden_dim, 2 * hidden_dim), const),   # W2
                pl.BlockSpec((1, 2 * hidden_dim), const),            # b2
                pl.BlockSpec((2 * hidden_dim, d_out), const),        # W3
                pl.BlockSpec((1, d_out), const),                     # b3
            ],
            out_specs=pl.BlockSpec((tb, d_out), lambda i: (i, 0)),
        ),
        compiler_params=pltpu.CompilerParams(
            dimension_semantics=("parallel",),       # batch tiles split across v7x's 2 TCs
            vmem_limit_bytes=_VMEM_LIMIT_BYTES,
        ),
    )(z, w1, b1, w2, b2, w3, b3)

    return flat.reshape(B, window_size, n_features)


def generate_mask(key, batch_size, params, window_size, n_features, noise_dim):
    """Mimics MaskGenerator.forward(batch_size, device): draws z and runs the MLP."""
    z = jax.random.normal(key, (batch_size, noise_dim), jnp.float32)
    return mask_generator_forward(z, params, window_size, n_features), z


def init_params(key, window_size, n_features, hidden_dim, noise_dim):
    """Deterministic init mimicking nn.Linear default (uniform +/- 1/sqrt(fan_in)).
    Weights stored as (in_dim, out_dim)."""
    d_out = window_size * n_features
    dims = [(noise_dim, hidden_dim), (hidden_dim, hidden_dim * 2), (hidden_dim * 2, d_out)]
    params = []
    for fan_in, fan_out in dims:
        key, kw, kb = jax.random.split(key, 3)
        bound = 1.0 / (fan_in ** 0.5)
        w = jax.random.uniform(kw, (fan_in, fan_out), jnp.float32, -bound, bound)
        b = jax.random.uniform(kb, (1, fan_out), jnp.float32, -bound, bound)
        params += [w, b]
    return tuple(params)


def _reference_forward(z, params, window_size, n_features):
    """Pure-JAX reference for correctness check."""
    w1, b1, w2, b2, w3, b3 = params
    h1 = z @ w1 + b1
    h1 = jnp.where(h1 > 0, h1, 0.2 * h1)
    h2 = h1 @ w2 + b2
    h2 = jnp.where(h2 > 0, h2, 0.2 * h2)
    h3 = h2 @ w3 + b3
    out = 1.0 / (1.0 + jnp.exp(-h3))
    return out.reshape(z.shape[0], window_size, n_features)


if __name__ == "__main__":
    # Small shapes consistent with the module: window_size=8, n_features=4,
    # hidden_dim=32, noise_dim=16  ->  layers 16 -> 32 -> 64 -> 32, mask (B, 8, 4).
    window_size, n_features, hidden_dim, noise_dim = 8, 4, 32, 16

    key = jax.random.PRNGKey(0)
    key, kp, kz1, kz2 = jax.random.split(key, 4)
    params = init_params(kp, window_size, n_features, hidden_dim, noise_dim)

    # 1) small batch: single full-extent tile.
    batch = 8
    mask, z = generate_mask(kz1, batch, params, window_size, n_features, noise_dim)
    mask = jax.block_until_ready(mask)
    ref = _reference_forward(z, params, window_size, n_features)
    assert mask.shape == (batch, window_size, n_features), mask.shape
    assert bool(jnp.all((mask >= 0.0) & (mask <= 1.0)))
    assert jnp.allclose(mask, ref, atol=1e-4, rtol=1e-4), "mismatch vs reference (B=8)"

    # 2) multi-tile batch with a partial last tile (exercises grid + masked writeback).
    batch2 = 300
    z2 = jax.random.normal(kz2, (batch2, noise_dim), jnp.float32)
    mask2 = mask_generator_forward(z2, params, window_size, n_features, block_b=128)
    mask2 = jax.block_until_ready(mask2)
    ref2 = _reference_forward(z2, params, window_size, n_features)
    assert mask2.shape == (batch2, window_size, n_features), mask2.shape
    assert jnp.allclose(mask2, ref2, atol=1e-4, rtol=1e-4), "mismatch vs reference (B=300)"

    print("KERNEL_OK")
</pallas_src>

<mosaic_0001>
module attributes {stable_mosaic.version = 11 : i64} {
  func.func @_maskgen_kernel(%arg0: i32, %arg1: memref<8x16xf32, #tpu.memory_space<vmem>>, %arg2: memref<16x32xf32, #tpu.memory_space<vmem>>, %arg3: memref<1x32xf32, #tpu.memory_space<vmem>>, %arg4: memref<32x64xf32, #tpu.memory_space<vmem>>, %arg5: memref<1x64xf32, #tpu.memory_space<vmem>>, %arg6: memref<64x32xf32, #tpu.memory_space<vmem>>, %arg7: memref<1x32xf32, #tpu.memory_space<vmem>>, %arg8: memref<8x32xf32, #tpu.memory_space<vmem>>) attributes {dimension_semantics = [#tpu.dimension_semantics<parallel>], iteration_bounds = array<i64: 1>, scalar_prefetch = 0 : i64, scratch_operands = 0 : i64, tpu.core_type = #tpu.core_type<tc>, window_params = [{transform_indices = @transform_0, window_bounds = array<i64: 8, 16>}, {pipeline_mode = #tpu.pipeline_mode<synchronous>, transform_indices = @transform_1, window_bounds = array<i64: 16, 32>}, {pipeline_mode = #tpu.pipeline_mode<synchronous>, transform_indices = @transform_2, window_bounds = array<i64: 1, 32>}, {pipeline_mode = #tpu.pipeline_mode<synchronous>, transform_indices = @transform_3, window_bounds = array<i64: 32, 64>}, {pipeline_mode = #tpu.pipeline_mode<synchronous>, transform_indices = @transform_4, window_bounds = array<i64: 1, 64>}, {pipeline_mode = #tpu.pipeline_mode<synchronous>, transform_indices = @transform_5, window_bounds = array<i64: 64, 32>}, {pipeline_mode = #tpu.pipeline_mode<synchronous>, transform_indices = @transform_6, window_bounds = array<i64: 1, 32>}, {transform_indices = @transform_7, window_bounds = array<i64: 8, 32>}]} {
    %c0 = arith.constant 0 : index
    %c0_0 = arith.constant 0 : index
    %0 = vector.load %arg1[%c0, %c0_0] : memref<8x16xf32, #tpu.memory_space<vmem>>, vector<8x16xf32>
    %c0_1 = arith.constant 0 : index
    %c0_2 = arith.constant 0 : index
    %1 = vector.load %arg2[%c0_1, %c0_2] : memref<16x32xf32, #tpu.memory_space<vmem>>, vector<16x32xf32>
    %cst = arith.constant dense<0.000000e+00> : vector<8x32xf32>
    %2 = tpu.matmul %0, %1, %cst {dimension_numbers = #tpu.dot_dimension_numbers<[1], [0], [0], [1], [0, 0, 1, 1], [], []>} : vector<8x16xf32>, vector<16x32xf32>, vector<8x32xf32> -> vector<8x32xf32>
    %c0_3 = arith.constant 0 : index
    %c0_4 = arith.constant 0 : index
    %3 = vector.load %arg3[%c0_3, %c0_4] : memref<1x32xf32, #tpu.memory_space<vmem>>, vector<1x32xf32>
    %4 = vector.broadcast %3 : vector<1x32xf32> to vector<8x32xf32>
    %5 = arith.addf %2, %4 : vector<8x32xf32>
    %cst_5 = arith.constant 0.000000e+00 : f32
    %6 = vector.broadcast %cst_5 : f32 to vector<8x32xf32>
    %7 = arith.cmpf ogt, %5, %6 : vector<8x32xf32>
    %cst_6 = arith.constant 2.000000e-01 : f32
    %8 = vector.broadcast %cst_6 : f32 to vector<8x32xf32>
    %9 = arith.mulf %8, %5 : vector<8x32xf32>
    %10 = arith.select %7, %5, %9 : vector<8x32xi1>, vector<8x32xf32>
    %c0_7 = arith.constant 0 : index
    %c0_8 = arith.constant 0 : index
    %11 = vector.load %arg4[%c0_7, %c0_8] : memref<32x64xf32, #tpu.memory_space<vmem>>, vector<32x64xf32>
    %cst_9 = arith.constant dense<0.000000e+00> : vector<8x64xf32>
    %12 = tpu.matmul %10, %11, %cst_9 {dimension_numbers = #tpu.dot_dimension_numbers<[1], [0], [0], [1], [0, 0, 1, 1], [], []>} : vector<8x32xf32>, vector<32x64xf32>, vector<8x64xf32> -> vector<8x64xf32>
    %c0_10 = arith.constant 0 : index
    %c0_11 = arith.constant 0 : index
    %13 = vector.load %arg5[%c0_10, %c0_11] : memref<1x64xf32, #tpu.memory_space<vmem>>, vector<1x64xf32>
    %14 = vector.broadcast %13 : vector<1x64xf32> to vector<8x64xf32>
    %15 = arith.addf %12, %14 : vector<8x64xf32>
    %cst_12 = arith.constant 0.000000e+00 : f32
    %16 = vector.broadcast %cst_12 : f32 to vector<8x64xf32>
    %17 = arith.cmpf ogt, %15, %16 : vector<8x64xf32>
    %cst_13 = arith.constant 2.000000e-01 : f32
    %18 = vector.broadcast %cst_13 : f32 to vector<8x64xf32>
    %19 = arith.mulf %18, %15 : vector<8x64xf32>
    %20 = arith.select %17, %15, %19 : vector<8x64xi1>, vector<8x64xf32>
    %c0_14 = arith.constant 0 : index
    %c0_15 = arith.constant 0 : index
    %21 = vector.load %arg6[%c0_14, %c0_15] : memref<64x32xf32, #tpu.memory_space<vmem>>, vector<64x32xf32>
    %cst_16 = arith.constant dense<0.000000e+00> : vector<8x32xf32>
    %22 = tpu.matmul %20, %21, %cst_16 {dimension_numbers = #tpu.dot_dimension_numbers<[1], [0], [0], [1], [0, 0, 1, 1], [], []>} : vector<8x64xf32>, vector<64x32xf32>, vector<8x32xf32> -> vector<8x32xf32>
    %c0_17 = arith.constant 0 : index
    %c0_18 = arith.constant 0 : index
    %23 = vector.load %arg7[%c0_17, %c0_18] : memref<1x32xf32, #tpu.memory_space<vmem>>, vector<1x32xf32>
    %24 = vector.broadcast %23 : vector<1x32xf32> to vector<8x32xf32>
    %25 = arith.addf %22, %24 : vector<8x32xf32>
    %cst_19 = arith.constant 0.000000e+00 : f32
    %26 = vector.broadcast %cst_19 : f32 to vector<8x32xf32>
    %27 = arith.subf %26, %25 : vector<8x32xf32>
    %28 = math.exp %27 : vector<8x32xf32>
    %cst_20 = arith.constant 1.000000e+00 : f32
    %29 = vector.broadcast %cst_20 : f32 to vector<8x32xf32>
    %30 = arith.addf %29, %28 : vector<8x32xf32>
    %cst_21 = arith.constant 1.000000e+00 : f32
    %31 = vector.broadcast %cst_21 : f32 to vector<8x32xf32>
    %32 = arith.divf %31, %30 : vector<8x32xf32>
    %c0_22 = arith.constant 0 : index
    %c0_23 = arith.constant 0 : index
    %33 = vector.load %arg8[%c0_22, %c0_23] : memref<8x32xf32, #tpu.memory_space<vmem>>, vector<8x32xf32>
    tpu.vector_store %arg8[%c0_22, %c0_23], %32 {strides = array<i32>} : memref<8x32xf32, #tpu.memory_space<vmem>>, vector<8x32xf32>,
    return
  }
  func.func @transform_0(%arg0: i32) -> (i32, i32) {
    %c0_i32 = arith.constant 0 : i32
    %c0_i32_0 = arith.constant 0 : i32
    return %arg0, %c0_i32 : i32, i32
  }
  func.func @transform_1(%arg0: i32) -> (i32, i32) {
    %c0_i32 = arith.constant 0 : i32
    %c0_i32_0 = arith.constant 0 : i32
    %c0_i32_1 = arith.constant 0 : i32
    return %c0_i32, %c0_i32_0 : i32, i32
  }
  func.func @transform_2(%arg0: i32) -> (i32, i32) {
    %c0_i32 = arith.constant 0 : i32
    %c0_i32_0 = arith.constant 0 : i32
    %c0_i32_1 = arith.constant 0 : i32
    return %c0_i32, %c0_i32_0 : i32, i32
  }
  func.func @transform_3(%arg0: i32) -> (i32, i32) {
    %c0_i32 = arith.constant 0 : i32
    %c0_i32_0 = arith.constant 0 : i32
    %c0_i32_1 = arith.constant 0 : i32
    return %c0_i32, %c0_i32_0 : i32, i32
  }
  func.func @transform_4(%arg0: i32) -> (i32, i32) {
    %c0_i32 = arith.constant 0 : i32
    %c0_i32_0 = arith.constant 0 : i32
    %c0_i32_1 = arith.constant 0 : i32
    return %c0_i32, %c0_i32_0 : i32, i32
  }
  func.func @transform_5(%arg0: i32) -> (i32, i32) {
    %c0_i32 = arith.constant 0 : i32
    %c0_i32_0 = arith.constant 0 : i32
    %c0_i32_1 = arith.constant 0 : i32
    return %c0_i32, %c0_i32_0 : i32, i32
  }
  func.func @transform_6(%arg0: i32) -> (i32, i32) {
    %c0_i32 = arith.constant 0 : i32
    %c0_i32_0 = arith.constant 0 : i32
    %c0_i32_1 = arith.constant 0 : i32
    return %c0_i32, %c0_i32_0 : i32, i32
  }
  func.func @transform_7(%arg0: i32) -> (i32, i32) {
    %c0_i32 = arith.constant 0 : i32
    %c0_i32_0 = arith.constant 0 : i32
    return %arg0, %c0_i32 : i32, i32
  }
}

</mosaic_0001>

<bundles_post_ra>
// kernel: mask_generator_forward.1
= control target key start
LH: loop header
LB: loop body
LE: loop exit
PB: predicated region body
PF: predicated region fallthrough
CT: control target
= control target key end

     0   :  { %v367_v0 = vmov 0.0   ;;  %vm368_vm0 = vmmov 0   ;;  %vm36_vm1 = vcmask 130048   ;;  %vm124_vm3 = vcmask 261120   ;;  %s468_s1 = inlined_call_operand.vmem [shape: f32[16,32], index: 1, kind: input, shape index: {}]   ;;  %s469_s0 = inlined_call_operand.vmem [shape: f32[8,16], index: 0, kind: input, shape index: {}]   ;;  %s470_s3 = inlined_call_operand.vmem [shape: f32[32,64], index: 3, kind: input, shape index: {}]   ;;  %s471_s5 = inlined_call_operand.vmem [shape: f32[64,32], index: 5, kind: input, shape index: {}]   ;;  %s472_s2 = inlined_call_operand.vmem [shape: f32[1,32], index: 2, kind: input, shape index: {}]   ;;  %s473_s4 = inlined_call_operand.vmem [shape: f32[1,64], index: 4, kind: input, shape index: {}]   ;;  %s474_s6 = inlined_call_operand.vmem [shape: f32[1,32], index: 6, kind: input, shape index: {}]   ;;  %s475_s7 = inlined_call_operand.vmem [shape: f32[8,32], index: 7, kind: output, shape index: {}]  }
   0x1   :  { %324 = vmatprep.subr.mxu1 %v367_v0  ;;  %v28_v1 = vld [vmem:[%s468_s1 + $0x8] sm:$0xff]  ;;  %v27_v2 = vld [vmem:[%s468_s1] sm:$0xff]  ;;  %328 = vmatprep.mubr.msk.f32.mxu1 %vm368_vm0, %v367_v0  ;;  %v116_v4 = vld [vmem:[%s470_s3 + $0x18] sm:$0xff]  ;;  %vm216_vm5 = vcmask 523264  }
   0x2   :  { %325 = vmatpush3.msra.mxu1 %v28_v1  ;;  %v26_v3 = vld [vmem:[%s469_s0] sm:$0xff]  ;;  %342 = vmatprep.subr.mxu0 %v367_v0  ;;  %v115_v5 = vld [vmem:[%s470_s3 + $0x10] sm:$0xff]  ;;  %v114_v6 = vld [vmem:[%s470_s3 + $0x8] sm:$0xff] }
   0x3   :  { %326 = vmatprep.subr.mxu1 %v367_v0  ;;  %358 = vmatprep.mubr.msk.f32.mxu0 %vm368_vm0, %v367_v0  ;;  %v113_v7 = vld [vmem:[%s470_s3] sm:$0xff]  ;;  %v208_v8 = vld [vmem:[%s471_s5 + $0x38] sm:$0xff]  ;;  %v207_v9 = vld [vmem:[%s471_s5 + $0x30] sm:$0xff] }
   0x4   :  { %327 = vmatpush3.msra.mxu1 %v27_v2  ;;  %343 = vmatpush3.msra.mxu0 %v208_v8  ;;  %v206_v10 = vld [vmem:[%s471_s5 + $0x28] sm:$0xff]  ;;  %v205_v11 = vld [vmem:[%s471_s5 + $0x20] sm:$0xff]  ;;  %v204_v12 = vld [vmem:[%s471_s5 + $0x18] sm:$0xff] }
   0x5   :  { %329 = vmatmul.mubr.msk.f32.vlgmr.msra.gmra.mxu1 %vm36_vm1, %v26_v3  ;;  %331 = vmatprep.subr.mxu1 %v367_v0  ;;  %v301_v13 = vld [vmem:[%s472_s2] ss:$0 sm:$0xff]  ;;  %v203_v19 = vld [vmem:[%s471_s5 + $0x10] sm:$0xff]  ;;  %v202_v20 = vld [vmem:[%s471_s5 + $0x8] sm:$0xff] }
   0x6   :  { %332 = vmatpush3.msra.mxu1 %v116_v4  ;;  %339 = vmatprep.mubr.msk.f32.mxu1 %vm368_vm0, %v367_v0  ;;  %v201_v21 = vld [vmem:[%s471_s5] sm:$0xff] }
   0x7   :  { %333 = vmatprep.subr.mxu1 %v367_v0  ;;  %344 = vmatprep.subr.mxu0 %v367_v0  ;;  %v303_v22 = vld [vmem:[%s473_s4] ss:$0 sm:$0xff] }
   0x8   :  { %334 = vmatpush3.msra.mxu1 %v115_v5  ;;  %345 = vmatpush3.msra.mxu0 %v207_v9  ;;  %v305_v28 = vld [vmem:[%s474_s6] ss:$0 sm:$0xff] }
   0x9   :  { %335 = vmatprep.subr.mxu1 %v367_v0  ;;  %346 = vmatprep.subr.mxu0 %v367_v0 }
   0xa   :  { %336 = vmatpush3.msra.mxu1 %v114_v6  ;;  %347 = vmatpush3.msra.mxu0 %v206_v10 }
   0xb   :  { %337 = vmatprep.subr.mxu1 %v367_v0  ;;  %348 = vmatprep.subr.mxu0 %v367_v0 }
   0xc   :  { %338 = vmatpush3.msra.mxu1 %v113_v7  ;;  %349 = vmatpush3.msra.mxu0 %v205_v11 }
   0xd   :  { %350 = vmatprep.subr.mxu0 %v367_v0 }
   0xe   :  { %351 = vmatpush3.msra.mxu0 %v204_v12 }
   0xf   :  { %352 = vmatprep.subr.mxu0 %v367_v0 }
  0x10   :  { %353 = vmatpush3.msra.mxu0 %v203_v19 }
  0x11   :  { %354 = vmatprep.subr.mxu0 %v367_v0 }
  0x12   :  { %355 = vmatpush3.msra.mxu0 %v202_v20 }
  0x13   :  { %356 = vmatprep.subr.mxu0 %v367_v0 }
  0x14   :  { %357 = vmatpush3.msra.mxu0 %v201_v21 }
  0xc5   :  { %v106_v14 = vpop.f32.mrf.mxu1 }
  0xc6   :  { %v107_v15 = vadd.f32 %v301_v13, %v106_v14 }
  0xc7   :  { %v330_v16 = vpop.f32.mrf.mxu1 }
  0xc8   :  { %vm110_vm2 = vcmp.gt.f32.partialorder %v107_v15, 0.0  ;;  %v111_v17 = vmul.f32 0.2, %v107_v15 }
  0xca   :  { %v112_v18 = vsel %vm110_vm2, %v107_v15, %v111_v17 }
  0xcb   :  { %340 = vmatmul.mubr.msk.f32.vlgmr.msra.gmra.mxu1 %vm124_vm3, %v112_v18 }
 0x18b   :  { %v194_v23 = vpop.f32.mrf.mxu1 }
 0x18c   :  { %v195_v24 = vadd.f32 %v303_v22, %v194_v23 }
 0x18d   :  { %v341_v25 = vpop.f32.mrf.mxu1 }
 0x18e   :  { %vm198_vm4 = vcmp.gt.f32.partialorder %v195_v24, 0.0  ;;  %v199_v26 = vmul.f32 0.2, %v195_v24 }
 0x190   :  { %v200_v27 = vsel %vm198_vm4, %v195_v24, %v199_v26 }
 0x191   :  { %359 = vmatmul.mubr.msk.f32.vlgmr.msra.gmra.mxu0 %vm216_vm5, %v200_v27 }
 0x251   :  { %v286_v29 = vpop.f32.mrf.mxu0 }
 0x252   :  { %v287_v30 = vadd.f32 %v305_v28, %v286_v29 }
 0x253   :  { %v360_v31 = vpop.f32.mrf.mxu0 }
 0x254   :  { %v290_v32 = vsub.f32 0.0, %v287_v30 }
 0x256   :  { %v291_v33 = vmul.f32 1.442695, %v290_v32 }
 0x258   :  { %363 = vpow2.f32 %v291_v33 }
 0x265   :  { %v364_v34 = vpop.eup %363 }
 0x266   :  { %v293_v35 = vadd.f32 1.0, %v364_v34 }
 0x268   :  { %365 = vrcp.f32 %v293_v35 }
 0x275   :  { %v366_v36 = vpop.eup %365 }
 0x276   :  { %296 = vst.msk [vmem:[%s475_s7] sm:$0xff] %vm124_vm3, %v366_v36 }

</bundles_post_ra>
